<compile_context>
chip_gen: v6e
topology: v6e:2x2x1
jax: 0.10.0
libtpu: 0.0.40
codegen_flags: <defaults>
</compile_context>

<pallas_src>
import jax
import jax.numpy as jnp
from jax.experimental import pallas as pl
from jax.experimental.pallas import tpu as pltpu

_LANES = 128
_SUBLANES = 8
# Cap each tile so double-buffered input+output (~4x tile bytes) fits
# comfortably in v7x's 64 MiB VMEM (32 MiB scoped default) as well as
# v5e/v6e's 128 MiB.
_MAX_TILE_BYTES = 4 * 1024 * 1024


def _zero_kernel(x_ref, o_ref):
    # Elementwise multiply by zero. The vmul is free filler in this
    # HBM-bandwidth-bound kernel; keeping it preserves torch.mul(x, 0)
    # semantics (NaN/Inf propagate to NaN, -x -> -0.0).
    o_ref[...] = x_ref[...] * jnp.zeros((), dtype=x_ref.dtype)


def _pick_block_rows(rows, row_bytes):
    """Largest legal row tile: full axis, or a multiple of 8 capped by VMEM."""
    max_rows = max(_SUBLANES, int(_MAX_TILE_BYTES // max(row_bytes, 1)))
    max_rows = (max_rows // _SUBLANES) * _SUBLANES
    if rows <= max_rows:
        return rows      # equals the full array dim -> always a legal block dim
    return max_rows      # multiple of 8; ragged edge block is auto-masked


def _zero_2d(x2):
    rows, cols = x2.shape
    itemsize = jnp.dtype(x2.dtype).itemsize
    block_rows = _pick_block_rows(rows, cols * itemsize)
    grid = (pl.cdiv(rows, block_rows),)
    return pl.pallas_call(
        _zero_kernel,
        out_shape=jax.ShapeDtypeStruct((rows, cols), x2.dtype),
        grid=grid,
        in_specs=[pl.BlockSpec((block_rows, cols), lambda i: (i, 0))],
        out_specs=pl.BlockSpec((block_rows, cols), lambda i: (i, 0)),
        compiler_params=pltpu.CompilerParams(
            dimension_semantics=("parallel",),
        ),
    )(x2)


def zero_forward(x, masks=None, lengths=None):
    """Pallas equivalent of Zero.forward(x, masks, lengths) -> x * 0."""
    total = x.size
    if total == 0:
        return x
    if total % _LANES == 0:
        # Lane-dense view: last dim a full 128-lane multiple -> unmasked stores.
        x2 = x.reshape(total // _LANES, _LANES)
    else:
        # Fallback: keep the full trailing dim (legal block dim), tile rows.
        last = x.shape[-1] if x.ndim >= 1 else total
        x2 = x.reshape(max(total // last, 1), last)
    out2 = _zero_2d(x2)
    return out2.reshape(x.shape)


if __name__ == "__main__":
    key = jax.random.PRNGKey(0)
    k_x, k_m = jax.random.split(key)

    batch, seq, d_model = 2, 8, 32
    x = jax.random.normal(k_x, (batch, seq, d_model), dtype=jnp.float32)
    masks = (jax.random.uniform(k_m, (batch, seq)) > 0.3).astype(jnp.float32)
    lengths = jnp.array([seq, seq - 2], dtype=jnp.int32)

    out = zero_forward(x, masks, lengths)
    out = jax.block_until_ready(out)

    assert out.shape == x.shape and out.dtype == x.dtype
    assert bool(jnp.all(out == 0.0))
    print("KERNEL_OK")
</pallas_src>

<mosaic_0001>
module attributes {stable_mosaic.version = 11 : i64} {
  func.func @_zero_kernel(%arg0: i32, %arg1: memref<4x128xf32, #tpu.memory_space<vmem>>, %arg2: memref<4x128xf32, #tpu.memory_space<vmem>>) attributes {dimension_semantics = [#tpu.dimension_semantics<parallel>], iteration_bounds = array<i64: 1>, scalar_prefetch = 0 : i64, scratch_operands = 0 : i64, tpu.core_type = #tpu.core_type<tc>, window_params = [{transform_indices = @transform_0, window_bounds = array<i64: 4, 128>}, {transform_indices = @transform_1, window_bounds = array<i64: 4, 128>}]} {
    %c0 = arith.constant 0 : index
    %c0_0 = arith.constant 0 : index
    %0 = vector.load %arg1[%c0, %c0_0] : memref<4x128xf32, #tpu.memory_space<vmem>>, vector<4x128xf32>
    %cst = arith.constant 0.000000e+00 : f32
    %1 = vector.broadcast %cst : f32 to vector<4x128xf32>
    %2 = arith.mulf %0, %1 : vector<4x128xf32>
    %c0_1 = arith.constant 0 : index
    %c0_2 = arith.constant 0 : index
    %3 = vector.load %arg2[%c0_1, %c0_2] : memref<4x128xf32, #tpu.memory_space<vmem>>, vector<4x128xf32>
    tpu.vector_store %arg2[%c0_1, %c0_2], %2 {strides = array<i32>} : memref<4x128xf32, #tpu.memory_space<vmem>>, vector<4x128xf32>,
    return
  }
  func.func @transform_0(%arg0: i32) -> (i32, i32) {
    %c0_i32 = arith.constant 0 : i32
    %c0_i32_0 = arith.constant 0 : i32
    return %arg0, %c0_i32 : i32, i32
  }
  func.func @transform_1(%arg0: i32) -> (i32, i32) {
    %c0_i32 = arith.constant 0 : i32
    %c0_i32_0 = arith.constant 0 : i32
    return %arg0, %c0_i32 : i32, i32
  }
}

</mosaic_0001>

<bundles_post_ra>
// kernel: tpu_custom_call.1
= control target key start
LH: loop header
LB: loop body
LE: loop exit
PB: predicated region body
PF: predicated region fallthrough
CT: control target
= control target key end

     0   :  { %6 = vsyncpa [#allocation3], 0  ;;  %s103_s0 = inlined_call_operand.hbm [shape: f32[4,128], index: 0, kind: input, shape index: {}]   ;;  %s104_s1 = inlined_call_operand.hbm [shape: f32[4,128], index: 1, kind: output, shape index: {}]  }
   0x1   :  { %7 = vsyncpa [#allocation4], 0  ;;  %s85_s6 = smov [#allocation2]  }
   0x2   :  { %s14_s7 = sshll.u32 %s85_s6, 4  ;;  %s15_s7 = int_to_ptr.vmem [resolvable:$true] %s14_s7 }
   0x3   :  { %s49_s8 = scalar_lea.vmem %s15_s7, 64  ;;  %p54_p1 = scmp.lt.s32.totalorder %s15_s7, %s15_s7 }
   0x4   :  { %p50_p0 = scmp.ne.s32.totalorder %s15_s7, %s49_s8  ;;  %p55_p2 = scmp.lt.s32.totalorder %s49_s8, %s49_s8 }
   0x6   :  { %p56_p3 = por %p55_p2, %p54_p1 }
   0x8   :  { %p57_p4 = pnand %p56_p3, %p50_p0 }
   0xa   :  { %60 = shalt.err (!%p57_p4)
}
   0xb   :  { %17 = dma.hbm_to_vmem [thread:$0]  %s103_s0, 64, %s15_s7, [#allocation3]  }
   0xc   :  { %81 = dma.done.wait [#allocation3], 64  }
   0xd   :  { %82 = vsyncadd [#allocation3], 4294967232  ;;  %s86_s11 = smov [#allocation5]   ;;  %v21_v0 = vld [vmem:[#allocation2] sm:$0xf] }
   0xe   :  { %s30_s12 = sshll.u32 %s86_s11, 4  ;;  %v22_v1 = vmul.f32 0.0, %v21_v0  ;;  %s31_s12 = int_to_ptr.vmem [resolvable:$true] %s30_s12 }
   0xf   :  { %s61_s13 = scalar_lea.vmem %s31_s12, 64  ;;  %p66_p6 = scmp.lt.s32.totalorder %s31_s12, %s31_s12 }
  0x10   :  { %23 = vst [vmem:[#allocation5] sm:$0xf] %v22_v1  ;;  %p62_p5 = scmp.ne.s32.totalorder %s31_s12, %s61_s13  ;;  %p67_p7 = scmp.lt.s32.totalorder %s61_s13, %s61_s13 }
  0x12   :  { %p68_p8 = por %p67_p7, %p66_p6 }
  0x14   :  { %p69_p9 = pnand %p68_p8, %p62_p5 }
  0x16   :  { %72 = shalt.err (!%p69_p9)
}
  0x17   :  { %33 = dma.vmem_to_hbm [thread:$0]  %s31_s12, 64, %s104_s1, [#allocation4]  }
  0x18   :  { %83 = dma.done.wait [#allocation4], 64  }
  0x19   :  { %84 = vsyncadd [#allocation4], 4294967232 }
  0x1a   :  { %37 = vsyncpa [#allocation3], 1 }
  0x1b   :  { %38 = vsyncpa [#allocation4], 1 }

</bundles_post_ra>
